<compile_context>
chip_gen: v5e
topology: v5e:2x2
jax: 0.10.0
libtpu: 0.0.40
codegen_flags: <defaults>
</compile_context>

<pallas_src>
from collections import namedtuple

import jax
import jax.numpy as jnp
from jax.experimental import pallas as pl
from jax.experimental.pallas import tpu as pltpu


def _channel_mix_kernel(x_ref, wt_ref, b_ref, o_ref):
    """y[b, o, s] = sum_c w[c, o] * x[b, c, s] + b[o]   (spatial s on lanes).

    Blocks:
      x_ref : (B_blk, C, TS)     activation tile, spatial axis lane-dense
      wt_ref: (Cout, C)          transposed weight, resident across the grid
      b_ref : (Cout, 1)          bias column, resident
      o_ref : (B_blk, Cout, TS)  lane-dense output tile
    """
    b_blk, c_in, ts = x_ref.shape
    cout = o_ref.shape[1]

    x = x_ref[...].astype(jnp.float32)        # (B_blk, C, TS)
    wt = wt_ref[...].astype(jnp.float32)      # (Cout, C)
    bias = b_ref[...].astype(jnp.float32)     # (Cout, 1)

    acc = jnp.broadcast_to(bias[None], (b_blk, cout, ts))
    # Tiny channel contraction (C, Cout << 128): unrolled VPU broadcast FMAs.
    # Keeps the MXU out of a K=4 matmul; this kernel is purely HBM-bound.
    for c in range(c_in):
        acc = acc + wt[None, :, c:c + 1] * x[:, c:c + 1, :]

    o_ref[...] = acc.astype(o_ref.dtype)


# Problems whose total (in + out) footprint is below this run as one grid step.
_SMALL_TOTAL_BYTES = 2 << 20  # 2 MiB
# Scoped VMEM budget: well under v7x's 64 MiB physical, above v5e's 16 MiB default.
_VMEM_LIMIT_BYTES = 48 * 1024 * 1024


def _run_engine(x_ncs, w_t, b_col, *, out_dtype):
    """Execute the synthetic 'engine' on (N, C, S) -> (N, Cout, S)."""
    n, c, s = x_ncs.shape
    cout = w_t.shape[0]

    in_item = jnp.dtype(x_ncs.dtype).itemsize
    out_item = jnp.dtype(out_dtype).itemsize
    total_bytes = n * s * (c * in_item + cout * out_item)

    cost = pl.CostEstimate(
        flops=2 * n * s * c * cout + n * s * cout,
        transcendentals=0,
        bytes_accessed=(n * c * s * in_item
                        + n * cout * s * out_item
                        + cout * c * 4 + cout * 4),
    )
    compiler_params = pltpu.CompilerParams(
        dimension_semantics=("parallel", "parallel"),
        vmem_limit_bytes=_VMEM_LIMIT_BYTES,
    )

    if total_bytes <= _SMALL_TOTAL_BYTES:
        # Small problem: single grid step, whole-array blocks -> one strided
        # DMA each way and the ~0.35 us fixed per-step cost paid exactly once.
        grid = (1, 1)
        in_specs = [
            pl.BlockSpec((n, c, s), lambda i, j: (0, 0, 0)),      # activations
            pl.BlockSpec((cout, c), lambda i, j: (0, 0)),         # weight^T
            pl.BlockSpec((cout, 1), lambda i, j: (0, 0)),         # bias col
        ]
        out_spec = pl.BlockSpec((n, cout, s), lambda i, j: (0, 0, 0))
    else:
        # Large lane-dense spatial tiles.  Per-step pipeline footprint is only
        # ~2*TS*(C*in_item + Cout*out_item) bytes double-buffered plus the f32
        # temporaries, so multi-MB tiles fit every generation's VMEM budget.
        ts_target = 65536 if max(in_item, out_item) <= 2 else 32768
        ts = min(ts_target, s)
        if ts < s:
            ts = max(128, (ts // 128) * 128)  # lane-aligned tile when tiling
        if n == 1 and ts >= s and s >= 256:
            # Keep >= 2 grid steps so both of v7x's TensorCores get work; on
            # single-TC v5e/v6e the extra step costs one hidden ~0.35 us.
            half = -(-s // 2)
            ts = ((half + 127) // 128) * 128
        assert ts == s or ts % 128 == 0, (ts, s)

        grid = (n, pl.cdiv(s, ts))
        in_specs = [
            pl.BlockSpec((1, c, ts), lambda i, j: (i, 0, j)),     # activations
            pl.BlockSpec((cout, c), lambda i, j: (0, 0)),         # weight^T, resident
            pl.BlockSpec((cout, 1), lambda i, j: (0, 0)),         # bias col, resident
        ]
        out_spec = pl.BlockSpec((1, cout, ts), lambda i, j: (i, 0, j))

    return pl.pallas_call(
        _channel_mix_kernel,
        out_shape=jax.ShapeDtypeStruct((n, cout, s), out_dtype),
        grid_spec=pltpu.PrefetchScalarGridSpec(
            num_scalar_prefetch=0,
            grid=grid,
            in_specs=in_specs,
            out_specs=out_spec,
        ),
        compiler_params=compiler_params,
        cost_estimate=cost,
    )(x_ncs, w_t, b_col)


Binding = namedtuple("Binding", ("name", "dtype", "shape", "data"))
Config = namedtuple(
    "Config",
    ("input_name", "output_name", "half",
     "in_channels", "out_channels", "batch", "height", "width"),
)


class TRTModelPallas:
    """Pallas stand-in for TRTModel (TensorRT inference wrapper)."""

    def __init__(self, config):
        self.input_name = config.input_name
        self.output_name = config.output_name

        # TODO(synk): the real TRT engine graph (deserialized ONNX) is opaque
        # from the module; a deterministic 1x1 conv (channel mix) + bias is the
        # stand-in "engine".
        kw, kb = jax.random.split(jax.random.PRNGKey(0))
        C, Cout = config.in_channels, config.out_channels
        self.in_channels, self.out_channels = C, Cout
        self.weight = jax.random.normal(kw, (C, Cout), jnp.float32) * 0.1
        self.bias = jax.random.normal(kb, (Cout,), jnp.float32) * 0.1
        # Kernel-side layouts (host-side, one-time): W^T and a bias column.
        self._w_t = jnp.transpose(self.weight)          # (Cout, C)
        self._b_col = self.bias.reshape(Cout, 1)        # (Cout, 1)

        # Mirror TRT's fp16-binding path, but use bfloat16 on TPU (bf16 is the
        # TPU-native 16-bit float; halves output HBM traffic).
        self.fp16 = bool(config.half)
        self.dynamic = False
        act_dtype = jnp.bfloat16 if self.fp16 else jnp.float32

        in_shape = (config.batch, C, config.height, config.width)
        out_shape = (config.batch, Cout, config.height, config.width)
        self.bindings = {
            self.input_name: Binding(self.input_name, act_dtype, in_shape, None),
            self.output_name: Binding(self.output_name, act_dtype, out_shape, None),
        }
        # TODO(synk): raw device pointers (binding_addrs / data_ptr) have no
        # JAX equivalent; arrays are passed by value to pallas_call instead.
        self.binding_addrs = {name: None for name in self.bindings}
        self.batch_size = self.bindings[self.input_name].shape[0]

    def forward(self, im):
        b, ch, h, w = im.shape

        # TODO(synk): dynamic-shape rebinding (context.set_binding_shape) has
        # no Pallas equivalent; static binding shapes are enforced instead.
        s = self.bindings[self.input_name].shape
        assert tuple(im.shape) == tuple(s), (
            f"input size {im.shape} "
            f"{'>' if self.dynamic else 'not equal to'} max model size {s}")

        # fp16/half path: the wrapper-side cast (im.half()) is folded into the
        # kernel -- the kernel reads the input in its native dtype, accumulates
        # in f32, and only the output binding is 16-bit.  This deletes a full
        # extra HBM read+write pass on the half=True path.
        out_dtype = self.bindings[self.output_name].dtype

        # Free reshape NCHW -> (N, C, H*W): spatial stays the last (lane) axis,
        # so no transpose passes through HBM on either side of the kernel.
        x = im.reshape(b, ch, h * w)
        y = _run_engine(x, self._w_t, self._b_col, out_dtype=out_dtype)
        # Free reshape back to the NCHW output binding layout.
        return y.reshape(b, self.out_channels, h, w)


if __name__ == "__main__":
    # --- Small-shape test (single-step whole-array path), half=False --------
    cfg = Config(input_name="images", output_name="output", half=False,
                 in_channels=4, out_channels=8, batch=2, height=16, width=16)
    model = TRTModelPallas(cfg)

    x = jax.random.normal(jax.random.PRNGKey(0), (2, 4, 16, 16), jnp.float32)
    y = model.forward(x)
    jax.block_until_ready(y)

    ref = (jnp.einsum("nchw,co->nohw", x, model.weight)
           + model.bias.reshape(1, -1, 1, 1))
    assert y.shape == (2, 8, 16, 16), y.shape
    assert jnp.allclose(y, ref, atol=1e-4), "Pallas result mismatch (small path)"

    # --- Tiled path test (ragged spatial tail, N=1 split for 2-TC occupancy) -
    cfg2 = Config(input_name="images", output_name="output", half=False,
                  in_channels=4, out_channels=8, batch=1, height=100, width=640)
    model2 = TRTModelPallas(cfg2)
    x2 = jax.random.normal(jax.random.PRNGKey(1), (1, 4, 100, 640), jnp.float32)
    y2 = model2.forward(x2)
    jax.block_until_ready(y2)
    ref2 = (jnp.einsum("nchw,co->nohw", x2, model2.weight)
            + model2.bias.reshape(1, -1, 1, 1))
    assert y2.shape == (1, 8, 100, 640), y2.shape
    assert jnp.allclose(y2, ref2, atol=1e-4), "Pallas result mismatch (tiled path)"

    # --- half=True binding path (bf16 output, cast folded into kernel) ------
    cfg3 = Config(input_name="images", output_name="output", half=True,
                  in_channels=4, out_channels=8, batch=2, height=16, width=16)
    model3 = TRTModelPallas(cfg3)
    y3 = model3.forward(x)
    jax.block_until_ready(y3)
    ref3 = (jnp.einsum("nchw,co->nohw", x, model3.weight)
            + model3.bias.reshape(1, -1, 1, 1))
    assert y3.dtype == jnp.bfloat16, y3.dtype
    assert jnp.allclose(y3.astype(jnp.float32), ref3, atol=5e-2), \
        "Pallas result mismatch (half path)"

    print("KERNEL_OK")
</pallas_src>

<mosaic_0001>
module attributes {stable_mosaic.version = 11 : i64} {
  func.func @_channel_mix_kernel(%arg0: i32, %arg1: i32, %arg2: memref<2x4x256xf32, #tpu.memory_space<vmem>>, %arg3: memref<8x4xf32, #tpu.memory_space<vmem>>, %arg4: memref<8x1xf32, #tpu.memory_space<vmem>>, %arg5: memref<2x8x256xf32, #tpu.memory_space<vmem>>) attributes {dimension_semantics = [#tpu.dimension_semantics<parallel>, #tpu.dimension_semantics<parallel>], iteration_bounds = array<i64: 1, 1>, scalar_prefetch = 0 : i64, scratch_operands = 0 : i64, tpu.core_type = #tpu.core_type<tc>, window_params = [{pipeline_mode = #tpu.pipeline_mode<synchronous>, transform_indices = @transform_0, window_bounds = array<i64: 2, 4, 256>}, {pipeline_mode = #tpu.pipeline_mode<synchronous>, transform_indices = @transform_1, window_bounds = array<i64: 8, 4>}, {pipeline_mode = #tpu.pipeline_mode<synchronous>, transform_indices = @transform_2, window_bounds = array<i64: 8, 1>}, {pipeline_mode = #tpu.pipeline_mode<synchronous>, transform_indices = @transform_3, window_bounds = array<i64: 2, 8, 256>}]} {
    %c0 = arith.constant 0 : index
    %c0_0 = arith.constant 0 : index
    %c0_1 = arith.constant 0 : index
    %0 = vector.load %arg2[%c0, %c0_0, %c0_1] : memref<2x4x256xf32, #tpu.memory_space<vmem>>, vector<2x4x256xf32>
    %c0_2 = arith.constant 0 : index
    %c0_3 = arith.constant 0 : index
    %1 = vector.load %arg3[%c0_2, %c0_3] : memref<8x4xf32, #tpu.memory_space<vmem>>, vector<8x4xf32>
    %c0_4 = arith.constant 0 : index
    %c0_5 = arith.constant 0 : index
    %2 = vector.load %arg4[%c0_4, %c0_5] : memref<8x1xf32, #tpu.memory_space<vmem>>, vector<8x1xf32>
    %3 = vector.shape_cast %2 : vector<8x1xf32> to vector<1x8x1xf32>
    %4 = vector.shape_cast %3 : vector<1x8x1xf32> to vector<1x8x1xf32>
    %5 = vector.broadcast %4 : vector<1x8x1xf32> to vector<2x8x256xf32>
    %6 = vector.extract_strided_slice %1 {offsets = [0, 0], sizes = [8, 1], strides = [1, 1]} : vector<8x4xf32> to vector<8x1xf32>
    %7 = vector.shape_cast %6 : vector<8x1xf32> to vector<1x8x1xf32>
    %8 = vector.extract_strided_slice %0 {offsets = [0, 0, 0], sizes = [2, 1, 256], strides = [1, 1, 1]} : vector<2x4x256xf32> to vector<2x1x256xf32>
    %9 = vector.broadcast %7 : vector<1x8x1xf32> to vector<2x8x256xf32>
    %10 = vector.broadcast %8 : vector<2x1x256xf32> to vector<2x8x256xf32>
    %11 = arith.mulf %9, %10 : vector<2x8x256xf32>
    %12 = arith.addf %5, %11 : vector<2x8x256xf32>
    %13 = vector.extract_strided_slice %1 {offsets = [0, 1], sizes = [8, 1], strides = [1, 1]} : vector<8x4xf32> to vector<8x1xf32>
    %14 = vector.shape_cast %13 : vector<8x1xf32> to vector<1x8x1xf32>
    %15 = vector.extract_strided_slice %0 {offsets = [0, 1, 0], sizes = [2, 1, 256], strides = [1, 1, 1]} : vector<2x4x256xf32> to vector<2x1x256xf32>
    %16 = vector.broadcast %14 : vector<1x8x1xf32> to vector<2x8x256xf32>
    %17 = vector.broadcast %15 : vector<2x1x256xf32> to vector<2x8x256xf32>
    %18 = arith.mulf %16, %17 : vector<2x8x256xf32>
    %19 = arith.addf %12, %18 : vector<2x8x256xf32>
    %20 = vector.extract_strided_slice %1 {offsets = [0, 2], sizes = [8, 1], strides = [1, 1]} : vector<8x4xf32> to vector<8x1xf32>
    %21 = vector.shape_cast %20 : vector<8x1xf32> to vector<1x8x1xf32>
    %22 = vector.extract_strided_slice %0 {offsets = [0, 2, 0], sizes = [2, 1, 256], strides = [1, 1, 1]} : vector<2x4x256xf32> to vector<2x1x256xf32>
    %23 = vector.broadcast %21 : vector<1x8x1xf32> to vector<2x8x256xf32>
    %24 = vector.broadcast %22 : vector<2x1x256xf32> to vector<2x8x256xf32>
    %25 = arith.mulf %23, %24 : vector<2x8x256xf32>
    %26 = arith.addf %19, %25 : vector<2x8x256xf32>
    %27 = vector.extract_strided_slice %1 {offsets = [0, 3], sizes = [8, 1], strides = [1, 1]} : vector<8x4xf32> to vector<8x1xf32>
    %28 = vector.shape_cast %27 : vector<8x1xf32> to vector<1x8x1xf32>
    %29 = vector.extract_strided_slice %0 {offsets = [0, 3, 0], sizes = [2, 1, 256], strides = [1, 1, 1]} : vector<2x4x256xf32> to vector<2x1x256xf32>
    %30 = vector.broadcast %28 : vector<1x8x1xf32> to vector<2x8x256xf32>
    %31 = vector.broadcast %29 : vector<2x1x256xf32> to vector<2x8x256xf32>
    %32 = arith.mulf %30, %31 : vector<2x8x256xf32>
    %33 = arith.addf %26, %32 : vector<2x8x256xf32>
    %c0_6 = arith.constant 0 : index
    %c0_7 = arith.constant 0 : index
    %c0_8 = arith.constant 0 : index
    %34 = vector.load %arg5[%c0_6, %c0_7, %c0_8] : memref<2x8x256xf32, #tpu.memory_space<vmem>>, vector<2x8x256xf32>
    tpu.vector_store %arg5[%c0_6, %c0_7, %c0_8], %33 {strides = array<i32>} : memref<2x8x256xf32, #tpu.memory_space<vmem>>, vector<2x8x256xf32>,
    return
  }
  func.func @transform_0(%arg0: i32, %arg1: i32) -> (i32, i32, i32) {
    %c0_i32 = arith.constant 0 : i32
    %c0_i32_0 = arith.constant 0 : i32
    %c0_i32_1 = arith.constant 0 : i32
    %c0_i32_2 = arith.constant 0 : i32
    return %c0_i32, %c0_i32_0, %c0_i32_1 : i32, i32, i32
  }
  func.func @transform_1(%arg0: i32, %arg1: i32) -> (i32, i32) {
    %c0_i32 = arith.constant 0 : i32
    %c0_i32_0 = arith.constant 0 : i32
    %c0_i32_1 = arith.constant 0 : i32
    return %c0_i32, %c0_i32_0 : i32, i32
  }
  func.func @transform_2(%arg0: i32, %arg1: i32) -> (i32, i32) {
    %c0_i32 = arith.constant 0 : i32
    %c0_i32_0 = arith.constant 0 : i32
    %c0_i32_1 = arith.constant 0 : i32
    return %c0_i32, %c0_i32_0 : i32, i32
  }
  func.func @transform_3(%arg0: i32, %arg1: i32) -> (i32, i32, i32) {
    %c0_i32 = arith.constant 0 : i32
    %c0_i32_0 = arith.constant 0 : i32
    %c0_i32_1 = arith.constant 0 : i32
    %c0_i32_2 = arith.constant 0 : i32
    return %c0_i32, %c0_i32_0, %c0_i32_1 : i32, i32, i32
  }
}

</mosaic_0001>

<bundles_post_ra>
// kernel: tpu_custom_call.1
= control target key start
LH: loop header
LB: loop body
LE: loop exit
PB: predicated region body
PF: predicated region fallthrough
CT: control target
= control target key end

     0   :  { %v183_v1 = vmov 0   ;;  %v184_v2 = vmov 1   ;;  %s225_s0 = inlined_call_operand.vmem [shape: f32[2,4,256], index: 0, kind: input, shape index: {}]   ;;  %s226_s1 = inlined_call_operand.vmem [shape: f32[8,4], index: 1, kind: input, shape index: {}]   ;;  %s227_s2 = inlined_call_operand.vmem [shape: f32[8,1], index: 2, kind: input, shape index: {}]   ;;  %s228_s3 = inlined_call_operand.hbm [shape: f32[2,8,256], index: 3, kind: output, shape index: {}]  }
   0x1   :  { %v17_v0 = vld [vmem:[%s226_s1] sm:$0xff]  ;;  %152 = vset.pattern.permute.xlu0 %v183_v1  ;;  %153 = vset.pattern.permute.xlu1 %v184_v2 }
   0x2   :  { %8 = vsyncpa [#allocation3], 0  ;;  %26 = vperm.xlu0 %152, %v17_v0   ;;  %52 = vperm.xlu1 %153, %v17_v0   ;;  %v185_v3 = vmov 3   ;;  %v18_v4 = vld [vmem:[%s227_s2] sm:$0xff]  ;;  %v186_v5 = vmov 2   ;;  %v16_v7 = vld [vmem:[%s225_s0 + $0x8] sm:$0xff] }
   0x3   :  { %155 = vset.pattern.permute.xlu2 %v185_v3  ;;  %v15_v6 = vld [vmem:[%s225_s0] sm:$0xff]  ;;  %v105_v10 = vperm.slane %v16_v7, 3  ;;  %v33_v13 = vperm.slane %v16_v7, 0  ;;  %v34_v14 = vperm.slane %v16_v7, 4  ;;  %v57_v19 = vperm.slane %v16_v7, 1  ;;  %s187_s0 = smov [#allocation2]  }
   0x4   :  { %100 = vperm.xlu2 %155, %v17_v0   ;;  %v103_v8 = vperm.slane %v15_v6, 3  ;;  %v104_v9 = vperm.slane %v15_v6, 7  ;;  %v31_v11 = vperm.slane %v15_v6, 0  ;;  %v32_v12 = vperm.slane %v15_v6, 4  ;;  %s131_s2 = sshll.u32 %s187_s0, 4  ;;  %s133_s21 = sshll.u32 %s228_s3, 4  ;;  %s132_s2 = int_to_ptr.vmem [resolvable:$true] %s131_s2  ;;  %s134_s21 = int_to_ptr.hbm [resolvable:$true] %s133_s21 }
   0x5   :  { %v55_v17 = vperm.slane %v15_v6, 1  ;;  %v56_v18 = vperm.slane %v15_v6, 5  ;;  %v58_v20 = vperm.slane %v16_v7, 5  ;;  %v79_v21 = vperm.slane %v15_v6, 2  ;;  %s188_s22 = smov 256   ;;  %s189_s23 = smov 16  }
   0x6   :  { %v80_v22 = vperm.slane %v15_v6, 6  ;;  %v81_v23 = vperm.slane %v16_v7, 2  ;;  %v82_v24 = vperm.slane %v16_v7, 6  ;;  %v106_v25 = vperm.slane %v16_v7, 7 }
   0x7   :  { %v111_v26 = vperm.slane %v103_v8, 3  ;;  %v112_v27 = vperm.slane %v104_v9, 3  ;;  %v113_v28 = vperm.slane %v105_v10, 3  ;;  %v39_v29 = vperm.slane %v31_v11, 0 }
   0x8   :  { %v40_v30 = vperm.slane %v32_v12, 0  ;;  %v41_v31 = vperm.slane %v33_v13, 0  ;;  %v42_v32 = vperm.slane %v34_v14, 0  ;;  %v63_v34 = vperm.slane %v55_v17, 1 }
   0x9   :  { %v64_v35 = vperm.slane %v56_v18, 1  ;;  %v65_v36 = vperm.slane %v57_v19, 1  ;;  %v66_v37 = vperm.slane %v58_v20, 1  ;;  %v87_v38 = vperm.slane %v79_v21, 2 }
   0xa   :  { %21 = vperm.xlu0 %152, %v18_v4   ;;  %154 = vset.pattern.permute.xlu1 %v186_v5  ;;  %v88_v39 = vperm.slane %v80_v22, 2  ;;  %v89_v40 = vperm.slane %v81_v23, 2  ;;  %v90_v41 = vperm.slane %v82_v24, 2  ;;  %v114_v42 = vperm.slane %v106_v25, 3 }
   0xb   :  { %76 = vperm.xlu1 %154, %v17_v0  }
  0x12   :  { %156 = vset.pattern.permute.xlu0 %v185_v3 }
  0x5e   :  { %v101_v33 = vpop.permute.xlu2 %100 }
  0x5f   :  { %v115_v43 = vmul.f32 %v111_v26, %v101_v33  ;;  %v116_v44 = vmul.f32 %v112_v27, %v101_v33  ;;  %v117_v45 = vmul.f32 %v113_v28, %v101_v33  ;;  %v118_v4 = vmul.f32 %v114_v42, %v101_v33 }
  0x74   :  { %v27_v15 = vpop.permute.xlu0 %26  ;;  %v53_v16 = vpop.permute.xlu1 %52 }
  0x75   :  { %v43_v46 = vmul.f32 %v39_v29, %v27_v15  ;;  %v44_v47 = vmul.f32 %v40_v30, %v27_v15  ;;  %v45_v48 = vmul.f32 %v41_v31, %v27_v15  ;;  %v46_v49 = vmul.f32 %v42_v32, %v27_v15 }
  0x76   :  { %v67_v50 = vmul.f32 %v63_v34, %v53_v16  ;;  %v68_v51 = vmul.f32 %v64_v35, %v53_v16  ;;  %v69_v52 = vmul.f32 %v65_v36, %v53_v16  ;;  %v70_v53 = vmul.f32 %v66_v37, %v53_v16 }
  0x7c   :  { %v22_v54 = vpop.permute.xlu0 %21 }
  0x7d   :  { %v47_v55 = vadd.f32 %v43_v46, %v22_v54  ;;  %v48_v56 = vadd.f32 %v44_v47, %v22_v54  ;;  %v49_v57 = vadd.f32 %v45_v48, %v22_v54  ;;  %v50_v58 = vadd.f32 %v46_v49, %v22_v54  ;;  %v77_v59 = vpop.permute.xlu1 %76 }
  0x7e   :  { %v91_v60 = vmul.f32 %v87_v38, %v77_v59  ;;  %v92_v61 = vmul.f32 %v88_v39, %v77_v59  ;;  %v93_v62 = vmul.f32 %v89_v40, %v77_v59  ;;  %v94_v63 = vmul.f32 %v90_v41, %v77_v59 }
  0x7f   :  { %v71_v0 = vadd.f32 %v67_v50, %v47_v55  ;;  %v72_v1 = vadd.f32 %v68_v51, %v48_v56  ;;  %v73_v2 = vadd.f32 %v69_v52, %v49_v57  ;;  %v74_v3 = vadd.f32 %v70_v53, %v50_v58 }
  0x81   :  { %v95_v5 = vadd.f32 %v91_v60, %v71_v0  ;;  %v96_v6 = vadd.f32 %v92_v61, %v72_v1  ;;  %v97_v7 = vadd.f32 %v93_v62, %v73_v2  ;;  %v98_v8 = vadd.f32 %v94_v63, %v74_v3 }
  0x83   :  { %v119_v9 = vadd.f32 %v115_v43, %v95_v5  ;;  %v120_v10 = vadd.f32 %v116_v44, %v96_v6  ;;  %v121_v11 = vadd.f32 %v117_v45, %v97_v7  ;;  %v122_v12 = vadd.f32 %v118_v4, %v98_v8 }
  0x85   :  { %123 = vst [vmem:[#allocation2] sm:$0xff] %v119_v9 }
  0x86   :  { %124 = vst [vmem:[#allocation2 + $0x8] sm:$0xff] %v120_v10 }
  0x87   :  { %125 = vst [vmem:[#allocation2 + $0x10] sm:$0xff] %v121_v11 }
  0x88   :  { %126 = vst [vmem:[#allocation2 + $0x18] sm:$0xff] %v122_v12 }
  0x89   :  { %139 = dma.vmem_to_hbm [thread:$0]  %s132_s2, 512, %s134_s21, [#allocation3], %s188_s22, %s188_s22, %s189_s23  }
  0x8a   :  { %181 = dma.done.wait [#allocation3], 512  }
  0x8b   :  { %182 = vsyncadd [#allocation3], 4294966784 }
  0x8c   :  { %144 = vsyncpa [#allocation3], 1 }

</bundles_post_ra>
